<compile_context>
chip_gen: v5e
topology: v5e:2x2
jax: 0.10.0
libtpu: 0.0.40
codegen_flags: <defaults>
</compile_context>

<pallas_src>
import functools

import jax
import jax.numpy as jnp
from jax.experimental import pallas as pl
from jax.experimental.pallas import tpu as pltpu


_ROW_TILE_MAX = 1024   # multiple of 256 (full MXU rows on v6e/v7x), bf16-friendly


def _round_up(n, m):
    return -(-n // m) * m


def _make_vae_kernel(with_noise: bool):
    """Kernel body: enc1+ReLU -> fused [mu||logvar] head -> (reparam) -> dec1+ReLU -> dec2."""

    def kernel(*refs):
        if with_noise:
            (x_ref, eps_ref,
             w1_ref, b1_ref, w2_ref, b2_ref, w3_ref, b3_ref, w4_ref, b4_ref,
             recon_ref, mulv_ref) = refs
        else:
            (x_ref,
             w1_ref, b1_ref, w2_ref, b2_ref, w3_ref, b3_ref, w4_ref, b4_ref,
             recon_ref, mulv_ref) = refs
            eps_ref = None

        x = x_ref[...]                                   # [TB, D]  bf16
        L = mulv_ref.shape[-1] // 2

        # ---- encoder: Linear(D -> I) + ReLU (f32 accumulate, bf16 activations) ----
        h1 = jnp.dot(x, w1_ref[...], preferred_element_type=jnp.float32)
        h1 = jnp.maximum(h1 + b1_ref[...], 0.0).astype(x.dtype)       # [TB, I]

        # ---- encoder: fused Linear(I -> 2L) head, lane-dense store ----
        mulv = jnp.dot(h1, w2_ref[...], preferred_element_type=jnp.float32)
        mulv = (mulv + b2_ref[...]).astype(x.dtype)                    # [TB, 2L]
        mulv_ref[...] = mulv

        mu = mulv[:, :L]
        if with_noise:
            logvar = mulv[:, L:]
            # std = exp(0.5*logvar); exp in f32 (EUP), v5e has no bf16 EUP path.
            std = jnp.exp(0.5 * logvar.astype(jnp.float32)).astype(x.dtype)
            z = eps_ref[...] * std + mu                                # [TB, L]
        else:
            z = mu

        # ---- decoder: Linear(L -> I) + ReLU ----
        h2 = jnp.dot(z, w3_ref[...], preferred_element_type=jnp.float32)
        h2 = jnp.maximum(h2 + b3_ref[...], 0.0).astype(x.dtype)       # [TB, I]

        # ---- decoder: Linear(I -> D) ----
        recon = jnp.dot(h2, w4_ref[...], preferred_element_type=jnp.float32)
        recon_ref[...] = (recon + b4_ref[...]).astype(recon_ref.dtype)  # [TB, D]

    return kernel


def init_vae_params(key, input_dim, latent_dim,
                    intermediate_dim_factor=0.5, dtype=jnp.bfloat16):
    """Init matching the nn.Linear shapes of the PyTorch module.

    PyTorch stores W as [out, in]; we keep W as [in, out] (pre-transposed) so
    the kernel computes x @ W + b == x @ W_pt.T + b.  The encoder head weight
    is kept whole as [I, 2L] (mu/logvar are column halves).  No Python ints
    are stored in the dict (dims are derived from weight shapes).
    """
    inter = int(input_dim * intermediate_dim_factor)

    def linear(k, fan_in, fan_out):
        kw, kb = jax.random.split(k)
        bound = 1.0 / float(fan_in) ** 0.5
        w = jax.random.uniform(kw, (fan_in, fan_out), jnp.float32, -bound, bound)
        b = jax.random.uniform(kb, (1, fan_out), jnp.float32, -bound, bound)
        return w.astype(dtype), b.astype(dtype)

    k1, k2, k3, k4 = jax.random.split(key, 4)
    w1, b1 = linear(k1, input_dim, inter)            # encoder[0]
    w2, b2 = linear(k2, inter, 2 * latent_dim)       # encoder[2]  (fused head)
    w3, b3 = linear(k3, latent_dim, inter)           # decoder[0]
    w4, b4 = linear(k4, inter, input_dim)            # decoder[2]
    return dict(w1=w1, b1=b1, w2=w2, b2=b2, w3=w3, b3=b3, w4=w4, b4=b4)


@functools.partial(jax.jit, static_argnames=("noise",))
def vae_forward(x, params, eps=None, noise=True):
    """Returns (reconstruction, mu, log_var), matching VAE.forward."""
    dtype = x.dtype
    orig_shape = x.shape
    if x.ndim == 3:
        x2d = x.reshape(-1, x.shape[-1])
    elif x.ndim == 2:
        x2d = x
    else:
        raise ValueError(f"Input must be 2D or 3D, got shape {orig_shape}")

    # Static dims from weight shapes (never traced scalars).
    D, I = params["w1"].shape
    L2 = params["w2"].shape[1]
    L = L2 // 2
    B = x2d.shape[0]

    # Row tiling: pad B to a sublane-friendly tile multiple.
    TB = min(_ROW_TILE_MAX, _round_up(B, 16))
    B_pad = _round_up(B, TB)
    if B_pad != B:
        x2d = jnp.pad(x2d, ((0, B_pad - B), (0, 0)))
    grid = (B_pad // TB,)

    # Pre-widen biases to f32 once (bf16-quantized values -> exact cast).
    b1 = params["b1"].astype(jnp.float32)
    b2 = params["b2"].astype(jnp.float32)
    b3 = params["b3"].astype(jnp.float32)
    b4 = params["b4"].astype(jnp.float32)

    def row_spec(cols):
        return pl.BlockSpec((TB, cols), lambda i: (i, 0))

    def resident_spec(shape):
        # Constant block index -> DMA'd once, VMEM-resident across the grid.
        return pl.BlockSpec(shape, lambda i: (0, 0))

    weight_specs = [
        resident_spec(params["w1"].shape), resident_spec(b1.shape),
        resident_spec(params["w2"].shape), resident_spec(b2.shape),
        resident_spec(params["w3"].shape), resident_spec(b3.shape),
        resident_spec(params["w4"].shape), resident_spec(b4.shape),
    ]
    weight_args = (params["w1"], b1, params["w2"], b2,
                   params["w3"], b3, params["w4"], b4)

    if noise:
        eps2d = eps.reshape(B, L).astype(dtype)
        if B_pad != B:
            eps2d = jnp.pad(eps2d, ((0, B_pad - B), (0, 0)))
        in_specs = [row_spec(D), row_spec(L)] + weight_specs
        args = (x2d, eps2d) + weight_args
    else:
        in_specs = [row_spec(D)] + weight_specs
        args = (x2d,) + weight_args

    recon, mulv = pl.pallas_call(
        _make_vae_kernel(noise),
        grid=grid,
        out_shape=(
            jax.ShapeDtypeStruct((B_pad, D), dtype),
            jax.ShapeDtypeStruct((B_pad, L2), dtype),
        ),
        in_specs=in_specs,
        out_specs=(row_spec(D), row_spec(L2)),
        compiler_params=pltpu.CompilerParams(
            dimension_semantics=("parallel",)),
    )(*args)

    recon = recon[:B]
    mu = mulv[:B, :L]
    logvar = mulv[:B, L:]

    if x.ndim == 3:
        N, T, _ = orig_shape
        recon = recon.reshape(N, T, D)
        mu = mu.reshape(N, T, L)
        logvar = logvar.reshape(N, T, L)
    return recon, mu, logvar


def _reference_forward(x, params, eps, noise=True):
    """Plain-JAX reference (same math / precision choices) for a sanity check."""
    dtype = x.dtype
    f32 = jnp.float32
    x2d = x.reshape(-1, x.shape[-1])
    L = params["w2"].shape[1] // 2

    h1 = jnp.maximum(jnp.dot(x2d, params["w1"], preferred_element_type=f32)
                     + params["b1"].astype(f32), 0.0).astype(dtype)
    mulv = (jnp.dot(h1, params["w2"], preferred_element_type=f32)
            + params["b2"].astype(f32)).astype(dtype)
    mu, lv = mulv[:, :L], mulv[:, L:]
    if noise:
        std = jnp.exp(0.5 * lv.astype(f32)).astype(dtype)
        z = eps.reshape(mu.shape).astype(dtype) * std + mu
    else:
        z = mu
    h2 = jnp.maximum(jnp.dot(z, params["w3"], preferred_element_type=f32)
                     + params["b3"].astype(f32), 0.0).astype(dtype)
    rec = (jnp.dot(h2, params["w4"], preferred_element_type=f32)
           + params["b4"].astype(f32)).astype(dtype)
    return rec, mu, lv


if __name__ == "__main__":
    # Module config: input_dim=256, latent_dim=64 -> intermediate_dim=128.
    INPUT_DIM, LATENT_DIM = 256, 64
    N, T = 2, 8                                      # input: [N, T, C]
    DTYPE = jnp.bfloat16

    key = jax.random.PRNGKey(0)
    k_params, k_x, k_eps = jax.random.split(key, 3)

    params = init_vae_params(k_params, INPUT_DIM, LATENT_DIM, dtype=DTYPE)
    x = jax.random.normal(k_x, (N, T, INPUT_DIM), jnp.float32).astype(DTYPE)
    # eps plays the role of torch.randn_like(std) in reparameterize().
    eps = jax.random.normal(k_eps, (N * T, LATENT_DIM), jnp.float32).astype(DTYPE)

    recon, mu, logvar = vae_forward(x, params, eps, noise=True)
    jax.block_until_ready((recon, mu, logvar))

    # Sanity check against a plain-JAX reference.
    r_ref, mu_ref, lv_ref = _reference_forward(x, params, eps, noise=True)
    assert recon.shape == (N, T, INPUT_DIM) and recon.dtype == DTYPE
    assert mu.shape == (N, T, LATENT_DIM) and logvar.shape == (N, T, LATENT_DIM)
    assert jnp.allclose(recon.reshape(-1, INPUT_DIM).astype(jnp.float32),
                        r_ref.astype(jnp.float32), atol=2e-1, rtol=2e-2)
    assert jnp.allclose(mu.reshape(-1, LATENT_DIM).astype(jnp.float32),
                        mu_ref.astype(jnp.float32), atol=3e-2, rtol=3e-2)
    assert jnp.allclose(logvar.reshape(-1, LATENT_DIM).astype(jnp.float32),
                        lv_ref.astype(jnp.float32), atol=3e-2, rtol=3e-2)

    # noise=False path (z = mu exactly, no eps stream).
    recon_nf, mu_nf, lv_nf = vae_forward(x, params, None, noise=False)
    jax.block_until_ready(recon_nf)
    r_ref_nf, _, _ = _reference_forward(x, params, eps, noise=False)
    assert jnp.allclose(recon_nf.reshape(-1, INPUT_DIM).astype(jnp.float32),
                        r_ref_nf.astype(jnp.float32), atol=2e-1, rtol=2e-2)

    print("KERNEL_OK")
</pallas_src>

<mosaic_0001>
module attributes {stable_mosaic.version = 11 : i64} {
  func.func @kernel(%arg0: i32, %arg1: memref<16x256xbf16, #tpu.memory_space<vmem>>, %arg2: memref<16x64xbf16, #tpu.memory_space<vmem>>, %arg3: memref<256x128xbf16, #tpu.memory_space<vmem>>, %arg4: memref<1x128xf32, #tpu.memory_space<vmem>>, %arg5: memref<128x128xbf16, #tpu.memory_space<vmem>>, %arg6: memref<1x128xf32, #tpu.memory_space<vmem>>, %arg7: memref<64x128xbf16, #tpu.memory_space<vmem>>, %arg8: memref<1x128xf32, #tpu.memory_space<vmem>>, %arg9: memref<128x256xbf16, #tpu.memory_space<vmem>>, %arg10: memref<1x256xf32, #tpu.memory_space<vmem>>, %arg11: memref<16x256xbf16, #tpu.memory_space<vmem>>, %arg12: memref<16x128xbf16, #tpu.memory_space<vmem>>) attributes {dimension_semantics = [#tpu.dimension_semantics<parallel>], iteration_bounds = array<i64: 1>, scalar_prefetch = 0 : i64, scratch_operands = 0 : i64, tpu.core_type = #tpu.core_type<tc>, window_params = [{transform_indices = @transform_0, window_bounds = array<i64: 16, 256>}, {transform_indices = @transform_1, window_bounds = array<i64: 16, 64>}, {pipeline_mode = #tpu.pipeline_mode<synchronous>, transform_indices = @transform_2, window_bounds = array<i64: 256, 128>}, {pipeline_mode = #tpu.pipeline_mode<synchronous>, transform_indices = @transform_3, window_bounds = array<i64: 1, 128>}, {pipeline_mode = #tpu.pipeline_mode<synchronous>, transform_indices = @transform_4, window_bounds = array<i64: 128, 128>}, {pipeline_mode = #tpu.pipeline_mode<synchronous>, transform_indices = @transform_5, window_bounds = array<i64: 1, 128>}, {pipeline_mode = #tpu.pipeline_mode<synchronous>, transform_indices = @transform_6, window_bounds = array<i64: 64, 128>}, {pipeline_mode = #tpu.pipeline_mode<synchronous>, transform_indices = @transform_7, window_bounds = array<i64: 1, 128>}, {pipeline_mode = #tpu.pipeline_mode<synchronous>, transform_indices = @transform_8, window_bounds = array<i64: 128, 256>}, {pipeline_mode = #tpu.pipeline_mode<synchronous>, transform_indices = @transform_9, window_bounds = array<i64: 1, 256>}, {transform_indices = @transform_10, window_bounds = array<i64: 16, 256>}, {transform_indices = @transform_11, window_bounds = array<i64: 16, 128>}]} {
    %c0 = arith.constant 0 : index
    %c0_0 = arith.constant 0 : index
    %0 = vector.load %arg1[%c0, %c0_0] : memref<16x256xbf16, #tpu.memory_space<vmem>>, vector<16x256xbf16>
    %c0_1 = arith.constant 0 : index
    %c0_2 = arith.constant 0 : index
    %1 = vector.load %arg3[%c0_1, %c0_2] : memref<256x128xbf16, #tpu.memory_space<vmem>>, vector<256x128xbf16>
    %cst = arith.constant dense<0.000000e+00> : vector<16x128xf32>
    %2 = tpu.matmul %0, %1, %cst {dimension_numbers = #tpu.dot_dimension_numbers<[1], [0], [0], [1], [0, 0, 1, 1], [], []>} : vector<16x256xbf16>, vector<256x128xbf16>, vector<16x128xf32> -> vector<16x128xf32>
    %c0_3 = arith.constant 0 : index
    %c0_4 = arith.constant 0 : index
    %3 = vector.load %arg4[%c0_3, %c0_4] : memref<1x128xf32, #tpu.memory_space<vmem>>, vector<1x128xf32>
    %4 = vector.broadcast %3 : vector<1x128xf32> to vector<16x128xf32>
    %5 = arith.addf %2, %4 : vector<16x128xf32>
    %cst_5 = arith.constant 0.000000e+00 : f32
    %6 = vector.broadcast %cst_5 : f32 to vector<16x128xf32>
    %7 = arith.maximumf %5, %6 : vector<16x128xf32>
    %8 = arith.truncf %7 : vector<16x128xf32> to vector<16x128xbf16>
    %c0_6 = arith.constant 0 : index
    %c0_7 = arith.constant 0 : index
    %9 = vector.load %arg5[%c0_6, %c0_7] : memref<128x128xbf16, #tpu.memory_space<vmem>>, vector<128x128xbf16>
    %cst_8 = arith.constant dense<0.000000e+00> : vector<16x128xf32>
    %10 = tpu.matmul %8, %9, %cst_8 {dimension_numbers = #tpu.dot_dimension_numbers<[1], [0], [0], [1], [0, 0, 1, 1], [], []>} : vector<16x128xbf16>, vector<128x128xbf16>, vector<16x128xf32> -> vector<16x128xf32>
    %c0_9 = arith.constant 0 : index
    %c0_10 = arith.constant 0 : index
    %11 = vector.load %arg6[%c0_9, %c0_10] : memref<1x128xf32, #tpu.memory_space<vmem>>, vector<1x128xf32>
    %12 = vector.broadcast %11 : vector<1x128xf32> to vector<16x128xf32>
    %13 = arith.addf %10, %12 : vector<16x128xf32>
    %14 = arith.truncf %13 : vector<16x128xf32> to vector<16x128xbf16>
    %c0_11 = arith.constant 0 : index
    %c0_12 = arith.constant 0 : index
    %15 = vector.load %arg12[%c0_11, %c0_12] : memref<16x128xbf16, #tpu.memory_space<vmem>>, vector<16x128xbf16>
    tpu.vector_store %arg12[%c0_11, %c0_12], %14 {strides = array<i32>} : memref<16x128xbf16, #tpu.memory_space<vmem>>, vector<16x128xbf16>,
    %16 = vector.extract_strided_slice %14 {offsets = [0, 0], sizes = [16, 64], strides = [1, 1]} : vector<16x128xbf16> to vector<16x64xbf16>
    %17 = vector.extract_strided_slice %14 {offsets = [0, 64], sizes = [16, 64], strides = [1, 1]} : vector<16x128xbf16> to vector<16x64xbf16>
    %18 = arith.extf %17 : vector<16x64xbf16> to vector<16x64xf32>
    %cst_13 = arith.constant 5.000000e-01 : f32
    %19 = vector.broadcast %cst_13 : f32 to vector<16x64xf32>
    %20 = arith.mulf %19, %18 : vector<16x64xf32>
    %21 = math.exp %20 : vector<16x64xf32>
    %22 = arith.truncf %21 : vector<16x64xf32> to vector<16x64xbf16>
    %c0_14 = arith.constant 0 : index
    %c0_15 = arith.constant 0 : index
    %23 = vector.load %arg2[%c0_14, %c0_15] : memref<16x64xbf16, #tpu.memory_space<vmem>>, vector<16x64xbf16>
    %24 = arith.mulf %23, %22 : vector<16x64xbf16>
    %25 = arith.addf %24, %16 : vector<16x64xbf16>
    %c0_16 = arith.constant 0 : index
    %c0_17 = arith.constant 0 : index
    %26 = vector.load %arg7[%c0_16, %c0_17] : memref<64x128xbf16, #tpu.memory_space<vmem>>, vector<64x128xbf16>
    %cst_18 = arith.constant dense<0.000000e+00> : vector<16x128xf32>
    %27 = tpu.matmul %25, %26, %cst_18 {dimension_numbers = #tpu.dot_dimension_numbers<[1], [0], [0], [1], [0, 0, 1, 1], [], []>} : vector<16x64xbf16>, vector<64x128xbf16>, vector<16x128xf32> -> vector<16x128xf32>
    %c0_19 = arith.constant 0 : index
    %c0_20 = arith.constant 0 : index
    %28 = vector.load %arg8[%c0_19, %c0_20] : memref<1x128xf32, #tpu.memory_space<vmem>>, vector<1x128xf32>
    %29 = vector.broadcast %28 : vector<1x128xf32> to vector<16x128xf32>
    %30 = arith.addf %27, %29 : vector<16x128xf32>
    %cst_21 = arith.constant 0.000000e+00 : f32
    %31 = vector.broadcast %cst_21 : f32 to vector<16x128xf32>
    %32 = arith.maximumf %30, %31 : vector<16x128xf32>
    %33 = arith.truncf %32 : vector<16x128xf32> to vector<16x128xbf16>
    %c0_22 = arith.constant 0 : index
    %c0_23 = arith.constant 0 : index
    %34 = vector.load %arg9[%c0_22, %c0_23] : memref<128x256xbf16, #tpu.memory_space<vmem>>, vector<128x256xbf16>
    %cst_24 = arith.constant dense<0.000000e+00> : vector<16x256xf32>
    %35 = tpu.matmul %33, %34, %cst_24 {dimension_numbers = #tpu.dot_dimension_numbers<[1], [0], [0], [1], [0, 0, 1, 1], [], []>} : vector<16x128xbf16>, vector<128x256xbf16>, vector<16x256xf32> -> vector<16x256xf32>
    %c0_25 = arith.constant 0 : index
    %c0_26 = arith.constant 0 : index
    %36 = vector.load %arg10[%c0_25, %c0_26] : memref<1x256xf32, #tpu.memory_space<vmem>>, vector<1x256xf32>
    %37 = vector.broadcast %36 : vector<1x256xf32> to vector<16x256xf32>
    %38 = arith.addf %35, %37 : vector<16x256xf32>
    %39 = arith.truncf %38 : vector<16x256xf32> to vector<16x256xbf16>
    %c0_27 = arith.constant 0 : index
    %c0_28 = arith.constant 0 : index
    %40 = vector.load %arg11[%c0_27, %c0_28] : memref<16x256xbf16, #tpu.memory_space<vmem>>, vector<16x256xbf16>
    tpu.vector_store %arg11[%c0_27, %c0_28], %39 {strides = array<i32>} : memref<16x256xbf16, #tpu.memory_space<vmem>>, vector<16x256xbf16>,
    return
  }
  func.func @transform_0(%arg0: i32) -> (i32, i32) {
    %c0_i32 = arith.constant 0 : i32
    %c0_i32_0 = arith.constant 0 : i32
    return %arg0, %c0_i32 : i32, i32
  }
  func.func @transform_1(%arg0: i32) -> (i32, i32) {
    %c0_i32 = arith.constant 0 : i32
    %c0_i32_0 = arith.constant 0 : i32
    return %arg0, %c0_i32 : i32, i32
  }
  func.func @transform_2(%arg0: i32) -> (i32, i32) {
    %c0_i32 = arith.constant 0 : i32
    %c0_i32_0 = arith.constant 0 : i32
    %c0_i32_1 = arith.constant 0 : i32
    return %c0_i32, %c0_i32_0 : i32, i32
  }
  func.func @transform_3(%arg0: i32) -> (i32, i32) {
    %c0_i32 = arith.constant 0 : i32
    %c0_i32_0 = arith.constant 0 : i32
    %c0_i32_1 = arith.constant 0 : i32
    return %c0_i32, %c0_i32_0 : i32, i32
  }
  func.func @transform_4(%arg0: i32) -> (i32, i32) {
    %c0_i32 = arith.constant 0 : i32
    %c0_i32_0 = arith.constant 0 : i32
    %c0_i32_1 = arith.constant 0 : i32
    return %c0_i32, %c0_i32_0 : i32, i32
  }
  func.func @transform_5(%arg0: i32) -> (i32, i32) {
    %c0_i32 = arith.constant 0 : i32
    %c0_i32_0 = arith.constant 0 : i32
    %c0_i32_1 = arith.constant 0 : i32
    return %c0_i32, %c0_i32_0 : i32, i32
  }
  func.func @transform_6(%arg0: i32) -> (i32, i32) {
    %c0_i32 = arith.constant 0 : i32
    %c0_i32_0 = arith.constant 0 : i32
    %c0_i32_1 = arith.constant 0 : i32
    return %c0_i32, %c0_i32_0 : i32, i32
  }
  func.func @transform_7(%arg0: i32) -> (i32, i32) {
    %c0_i32 = arith.constant 0 : i32
    %c0_i32_0 = arith.constant 0 : i32
    %c0_i32_1 = arith.constant 0 : i32
    return %c0_i32, %c0_i32_0 : i32, i32
  }
  func.func @transform_8(%arg0: i32) -> (i32, i32) {
    %c0_i32 = arith.constant 0 : i32
    %c0_i32_0 = arith.constant 0 : i32
    %c0_i32_1 = arith.constant 0 : i32
    return %c0_i32, %c0_i32_0 : i32, i32
  }
  func.func @transform_9(%arg0: i32) -> (i32, i32) {
    %c0_i32 = arith.constant 0 : i32
    %c0_i32_0 = arith.constant 0 : i32
    %c0_i32_1 = arith.constant 0 : i32
    return %c0_i32, %c0_i32_0 : i32, i32
  }
  func.func @transform_10(%arg0: i32) -> (i32, i32) {
    %c0_i32 = arith.constant 0 : i32
    %c0_i32_0 = arith.constant 0 : i32
    return %arg0, %c0_i32 : i32, i32
  }
  func.func @transform_11(%arg0: i32) -> (i32, i32) {
    %c0_i32 = arith.constant 0 : i32
    %c0_i32_0 = arith.constant 0 : i32
    return %arg0, %c0_i32 : i32, i32
  }
}

</mosaic_0001>

<bundles_post_ra>
// kernel: vae_forward.1
= control target key start
LH: loop header
LB: loop body
LE: loop exit
PB: predicated region body
PF: predicated region fallthrough
CT: control target
= control target key end

     0   :  { %17 = vsyncpa [#allocation3], 0  ;;  %s1167_s0 = inlined_call_operand.hbm [shape: bf16[16,256], index: 0, kind: input, shape index: {}]   ;;  %s1168_s1 = inlined_call_operand.vmem [shape: bf16[16,64], index: 1, kind: input, shape index: {}]   ;;  %s1169_s2 = inlined_call_operand.hbm [shape: bf16[256,128], index: 2, kind: input, shape index: {}]   ;;  %s1170_s3 = inlined_call_operand.vmem [shape: f32[1,128], index: 3, kind: input, shape index: {}]   ;;  %s1171_s4 = inlined_call_operand.hbm [shape: bf16[128,128], index: 4, kind: input, shape index: {}]   ;;  %s1172_s5 = inlined_call_operand.vmem [shape: f32[1,128], index: 5, kind: input, shape index: {}]   ;;  %s1173_s6 = inlined_call_operand.hbm [shape: bf16[64,128], index: 6, kind: input, shape index: {}]   ;;  %s1174_s7 = inlined_call_operand.vmem [shape: f32[1,128], index: 7, kind: input, shape index: {}]   ;;  %s1175_s8 = inlined_call_operand.hbm [shape: bf16[128,256], index: 8, kind: input, shape index: {}]   ;;  %s1176_s9 = inlined_call_operand.vmem [shape: f32[1,256], index: 9, kind: input, shape index: {}]   ;;  %s1177_s10 = inlined_call_operand.hbm [shape: bf16[16,256], index: 10, kind: output, shape index: {0}]   ;;  %s1178_s11 = inlined_call_operand.vmem [shape: bf16[16,128], index: 11, kind: output, shape index: {1}]  }
   0x1   :  { %18 = vsyncpa [#allocation6], 0 }
   0x2   :  { %19 = vsyncpa [#allocation9], 0  ;;  %s40_s19 = sshll.u32 %s1169_s2, 4  ;;  %s41_s19 = int_to_ptr.hbm [resolvable:$true] %s40_s19 }
   0x3   :  { %20 = vsyncpa [#allocation4], 0  ;;  %s1041_s20 = smov [#allocation5]   ;;  %s70_s24 = sshll.u32 %s1173_s6, 4  ;;  %s71_s24 = int_to_ptr.hbm [resolvable:$true] %s70_s24 }
   0x4   :  { %s42_s21 = sshll.u32 %s1041_s20, 4  ;;  %s1042_s25 = smov 64   ;;  %s43_s21 = int_to_ptr.vmem [resolvable:$true] %s42_s21 }
   0x5   :  { %s1043_s26 = smov 4   ;;  %s1044_s27 = smov [#allocation8]  }
   0x6   :  { %48 = dma.hbm_to_vmem [thread:$0]  %s41_s19, 2048, %s43_s21, [#allocation6], %s1042_s25, %s1042_s25, %s1043_s26  }
   0x7   :  { %s72_s28 = sshll.u32 %s1044_s27, 4  ;;  %s25_s2 = sshll.u32 %s1167_s0, 4  ;;  %s73_s28 = int_to_ptr.vmem [resolvable:$true] %s72_s28  ;;  %s26_s2 = int_to_ptr.hbm [resolvable:$true] %s25_s2 }
   0x8   :  { %78 = dma.hbm_to_vmem [thread:$0]  %s71_s24, 512, %s73_s28, [#allocation9], %s1042_s25, %s1042_s25, %s1043_s26  }
   0x9   :  { %s1045_s12 = smov [#allocation2]   ;;  %s55_s15 = sshll.u32 %s1171_s4, 4  ;;  %s56_s15 = int_to_ptr.hbm [resolvable:$true] %s55_s15 }
   0xa   :  { %s27_s13 = sshll.u32 %s1045_s12, 4  ;;  %s1046_s16 = smov 128   ;;  %s28_s13 = int_to_ptr.vmem [resolvable:$true] %s27_s13 }
   0xb   :  { %s1047_s17 = smov 8   ;;  %s1048_s0 = smov [#allocation7]  }
   0xc   :  { %33 = dma.hbm_to_vmem [thread:$0]  %s26_s2, 256, %s28_s13, [#allocation3], %s1046_s16, %s1046_s16, %s1047_s17  }
   0xd   :  { %s57_s18 = sshll.u32 %s1048_s0, 4  ;;  %s85_s21 = sshll.u32 %s1175_s8, 4  ;;  %s58_s18 = int_to_ptr.vmem [resolvable:$true] %s57_s18  ;;  %s86_s21 = int_to_ptr.hbm [resolvable:$true] %s85_s21 }
   0xe   :  { %63 = dma.hbm_to_vmem [thread:$0]  %s56_s15, 1024, %s58_s18, [#allocation6], %s1042_s25, %s1042_s25, %s1043_s26  }
   0xf   :  { %s1049_s22 = smov [#allocation10]  }
  0x10   :  { %s87_s4 = sshll.u32 %s1049_s22, 4  ;;  %s88_s4 = int_to_ptr.vmem [resolvable:$true] %s87_s4 }
  0x11   :  { %93 = dma.hbm_to_vmem [thread:$0]  %s86_s21, 2048, %s88_s4, [#allocation9], %s1046_s16, %s1046_s16, %s1047_s17  }
  0x12   :  { %1033 = dma.done.wait [#allocation3], 256  }
  0x13   :  { %1034 = vsyncadd [#allocation3], 4294967040 }
  0x14   :  { %1035 = dma.done.wait [#allocation6], 3072  }
  0x15   :  { %1036 = vsyncadd [#allocation6], 4294964224 }
  0x16   :  { %1037 = dma.done.wait [#allocation9], 2560  }
  0x17   :  { %1038 = vsyncadd [#allocation9], 4294964736  ;;  %v821_v0 = vld [vmem:[#allocation5 + $0x38] sm:$0xff]  ;;  %v820_v2 = vld [vmem:[#allocation5 + $0x30] sm:$0xff]  ;;  %vm447_vm0 = vcmask 523264   ;;  %s608_s13 = sshll.u32 %s1177_s10, 4  ;;  %s609_s13 = int_to_ptr.hbm [resolvable:$true] %s608_s13 }
  0x18   :  { %v829_v1 = vld [vmem:[#allocation5 + $0x78] sm:$0xff]  ;;  %261 = vmatpush.bf16.msra.mxu0 %v821_v0  ;;  %v828_v3 = vld [vmem:[#allocation5 + $0x70] sm:$0xff]  ;;  %v819_v4 = vld [vmem:[#allocation5 + $0x28] sm:$0xff] }
  0x19   :  { %275 = vmatpush.bf16.msra.mxu1 %v829_v1  ;;  %v827_v5 = vld [vmem:[#allocation5 + $0x68] sm:$0xff]  ;;  %v837_v6 = vld [vmem:[#allocation7 + $0x38] sm:$0xff]  ;;  %v836_v7 = vld [vmem:[#allocation7 + $0x30] sm:$0xff] }
  0x1a   :  { %360 = vmatpush.bf16.msra.mxu2 %v837_v6  ;;  %v818_v8 = vld [vmem:[#allocation5 + $0x20] sm:$0xff]  ;;  %v835_v10 = vld [vmem:[#allocation7 + $0x28] sm:$0xff]  ;;  %v817_v11 = vld [vmem:[#allocation5 + $0x18] sm:$0xff] }
  0x1b   :  { %v826_v9 = vld [vmem:[#allocation5 + $0x60] sm:$0xff]  ;;  %v825_v12 = vld [vmem:[#allocation5 + $0x58] sm:$0xff]  ;;  %v816_v14 = vld [vmem:[#allocation5 + $0x10] sm:$0xff] }
  0x1c   :  { %262 = vmatpush.bf16.msra.mxu0 %v820_v2  ;;  %v834_v13 = vld [vmem:[#allocation7 + $0x20] sm:$0xff]  ;;  %v824_v15 = vld [vmem:[#allocation5 + $0x50] sm:$0xff]  ;;  %v815_v16 = vld [vmem:[#allocation5 + $0x8] sm:$0xff] }
  0x1d   :  { %276 = vmatpush.bf16.msra.mxu1 %v828_v3  ;;  %v823_v17 = vld [vmem:[#allocation5 + $0x48] sm:$0xff]  ;;  %v814_v18 = vld [vmem:[#allocation5] sm:$0xff]  ;;  %v629_v20 = vld [vmem:[#allocation2] sm:$0xf] }
  0x1e   :  { %361 = vmatpush.bf16.msra.mxu2 %v836_v7  ;;  %v822_v19 = vld [vmem:[#allocation5 + $0x40] sm:$0xff]  ;;  %v813_v21 = vld [vmem:[#allocation2 + $0x4] sm:$0xf0]  ;;  %v812_v22 = vld [vmem:[#allocation2 + $0x4] sm:$0xf] }
  0x1f   :  { %v631_v23 = vld [vmem:[#allocation2 + $0x8] sm:$0xf0]  ;;  %v630_v24 = vor.u32 %v813_v21, %v629_v20  ;;  %v832_v27 = vld [vmem:[#allocation7 + $0x10] sm:$0xff]  ;;  %v831_v28 = vld [vmem:[#allocation7 + $0x8] sm:$0xff] }
  0x20   :  { %263 = vmatpush.bf16.msra.mxu0 %v819_v4  ;;  %v634_v25 = vor.u32 %v812_v22, %v631_v23  ;;  %v833_v26 = vld [vmem:[#allocation7 + $0x18] sm:$0xff]  ;;  %v830_v29 = vld [vmem:[#allocation7] sm:$0xff]  ;;  %v882_v32 = vld [vmem:[%s1170_s3] ss:$0 sm:$0xff] }
  0x21   :  { %277 = vmatpush.bf16.msra.mxu1 %v827_v5  ;;  %v883_v42 = vld [vmem:[%s1172_s5] ss:$0 sm:$0xff]  ;;  %v841_v44 = vld [vmem:[#allocation8 + $0x18] sm:$0xff]  ;;  %v839_v61 = vld [vmem:[#allocation8 + $0x8] sm:$0xff] }
  0x22   :  { %362 = vmatpush.bf16.msra.mxu2 %v835_v10  ;;  %455 = vmatpush.bf16.msra.mxu3 %v841_v44  ;;  %v840_v60 = vld [vmem:[#allocation8 + $0x10] sm:$0xff]  ;;  %v838_v62 = vld [vmem:[#allocation8] sm:$0xff]  ;;  %v857_v0 = vld [vmem:[#allocation10 + $0x74] sm:$0xf0] }
  0x23   :  { %v806_v63 = vld [vmem:[#allocation10 + $0x70] sm:$0xf]  ;;  %v856_v1 = vld [vmem:[#allocation10 + $0x74] sm:$0xf]  ;;  %v808_v3 = vld [vmem:[#allocation10 + $0x78] sm:$0xf0] }
  0x24   :  { %264 = vmatpush.bf16.msra.mxu0 %v818_v8  ;;  %v807_v2 = vor.u32 %v857_v0, %v806_v63  ;;  %v798_v4 = vld [vmem:[#allocation10 + $0x60] sm:$0xf]  ;;  %v855_v5 = vld [vmem:[#allocation10 + $0x64] sm:$0xf0]  ;;  %v811_v6 = vor.u32 %v856_v1, %v808_v3  ;;  %v854_v7 = vld [vmem:[#allocation10 + $0x64] sm:$0xf] }
  0x25   :  { %278 = vmatpush.bf16.msra.mxu1 %v826_v9  ;;  %v800_v8 = vld [vmem:[#allocation10 + $0x68] sm:$0xf0]  ;;  %v799_v9 = vor.u32 %v855_v5, %v798_v4  ;;  %v864_v23 = vld [vmem:[%s1168_s1] sm:$0xff]   ;;  %v766_v44 = vld [vmem:[#allocation10 + $0x20] sm:$0xf] }
  0x26   :  { %363 = vmatpush.bf16.msra.mxu2 %v834_v13  ;;  %456 = vmatpush.bf16.msra.mxu3 %v840_v60  ;;  %v803_v10 = vor.u32 %v854_v7, %v800_v8  ;;  %v852_v13 = vld [vmem:[#allocation10 + $0x54] sm:$0xf]  ;;  %v784_v20 = vld [vmem:[#allocation10 + $0x48] sm:$0xf0]  ;;  %v884_v63 = vld [vmem:[%s1174_s7] ss:$0 sm:$0xff] }
  0x27   :  { %v752_v60 = vld [vmem:[#allocation10 + $0x8] sm:$0xf0]  ;;  %s1050_s7 = smov [#allocation11]  }
  0x28   :  { %265 = vmatpush.bf16.msra.mxu0 %v817_v11  ;;  %v790_v11 = vld [vmem:[#allocation10 + $0x50] sm:$0xf]  ;;  %s606_s30 = sshll.u32 %s1050_s7, 4  ;;  %s607_s30 = int_to_ptr.vmem [resolvable:$true] %s606_s30 }
  0x29   :  { %279 = vmatpush.bf16.msra.mxu1 %v825_v12  ;;  %v853_v12 = vld [vmem:[#allocation10 + $0x54] sm:$0xf0] }
  0x2a   :  { %364 = vmatpush.bf16.msra.mxu2 %v833_v26  ;;  %457 = vmatpush.bf16.msra.mxu3 %v839_v61 }
  0x2c   :  { %266 = vmatpush.bf16.msra.mxu0 %v816_v14  ;;  %v792_v14 = vld [vmem:[#allocation10 + $0x58] sm:$0xf0] }
  0x2d   :  { %280 = vmatpush.bf16.msra.mxu1 %v824_v15  ;;  %v791_v15 = vor.u32 %v853_v12, %v790_v11 }
  0x2e   :  { %365 = vmatpush.bf16.msra.mxu2 %v832_v27  ;;  %458 = vmatpush.bf16.msra.mxu3 %v838_v62 }
  0x30   :  { %267 = vmatpush.bf16.msra.mxu0 %v815_v16  ;;  %v795_v16 = vor.u32 %v852_v13, %v792_v14 }
  0x31   :  { %281 = vmatpush.bf16.msra.mxu1 %v823_v17  ;;  %v782_v17 = vld [vmem:[#allocation10 + $0x40] sm:$0xf] }
  0x32   :  { %366 = vmatpush.bf16.msra.mxu2 %v831_v28  ;;  %570 = vmatpush.bf16.msrb.mxu3 %v807_v2 }
  0x34   :  { %268 = vmatpush.bf16.msra.mxu0 %v814_v18  ;;  %v851_v18 = vld [vmem:[#allocation10 + $0x44] sm:$0xf0] }
  0x35   :  { %282 = vmatpush.bf16.msra.mxu1 %v822_v19  ;;  %v850_v19 = vld [vmem:[#allocation10 + $0x44] sm:$0xf]  ;;  %v783_v21 = vor.u32 %v851_v18, %v782_v17 }
  0x36   :  { %367 = vmatpush.bf16.msra.mxu2 %v830_v29  ;;  %571 = vmatpush.bf16.msrb.mxu3 %v799_v9  ;;  %v787_v22 = vor.u32 %v850_v19, %v784_v20 }
  0x37   :  { %269 = vmatmul.bf16.vlgmr.msra.gmra.mxu0 %v630_v24  ;;  %v865_v24 = vunpack.c.l.bf16 %v864_v23 }
  0x38   :  { %283 = vmatmul.bf16.vlgmr.msra.gmra.mxu1 %v634_v25  ;;  %584 = vmatpush.bf16.msrb.mxu0 %v811_v6  ;;  %v866_v25 = vunpack.c.h.bf16 %v864_v23  ;;  %v484_v6 = vld [vmem:[%s1176_s9] sm:$0x3] }
  0x39   :  { %v487_v8 = vperm.slane %v484_v6, 1  ;;  %v486_v9 = vperm.slane %v484_v6, 0 }
  0x3a   :  { %572 = vmatpush.bf16.msrb.mxu3 %v791_v15 }
  0x3c   :  { %585 = vmatpush.bf16.msrb.mxu0 %v803_v10 }
  0x3e   :  { %573 = vmatpush.bf16.msrb.mxu3 %v783_v21 }
  0x40   :  { %586 = vmatpush.bf16.msrb.mxu0 %v795_v16 }
  0x44   :  { %587 = vmatpush.bf16.msrb.mxu0 %v787_v22 }
  0xb4   :  { %v270_v30 = vpop.f32.mrf.mxu0 }
  0xb5   :  { %v284_v31 = vpop.f32.mrf.mxu1  ;;  %v271_v33 = vadd.f32 %v882_v32, %v270_v30 }
  0xb7   :  { %v285_v35 = vadd.f32 %v284_v31, %v271_v33 }
  0xb9   :  { %v289_v39 = vmax.f32 %v285_v35, 0.0 }
  0xbc   :  { %v272_v34 = vpop.f32.mrf.mxu0 }
  0xbd   :  { %v273_v36 = vadd.f32 %v882_v32, %v272_v34  ;;  %v286_v37 = vpop.f32.mrf.mxu1 }
  0xbf   :  { %v287_v38 = vadd.f32 %v286_v37, %v273_v36 }
  0xc1   :  { %v290_v40 = vmax.f32 %v287_v38, 0.0  ;;  %v774_v38 = vld [vmem:[#allocation10 + $0x30] sm:$0xf] }
  0xc3   :  { %v291_v41 = vpack.c.bf16 %v290_v40, %v289_v39  ;;  %v849_v39 = vld [vmem:[#allocation10 + $0x34] sm:$0xf0]  ;;  %v848_v40 = vld [vmem:[#allocation10 + $0x34] sm:$0xf] }
  0xc5   :  { %368 = vmatmul.bf16.vlgmr.msra.gmra.mxu2 %v291_v41  ;;  %v775_v41 = vor.u32 %v849_v39, %v774_v38 }
  0xc7   :  { %574 = vmatpush.bf16.msrb.mxu3 %v775_v41 }
 0x148   :  { %v369_v43 = vpop.f32.mrf.mxu2 }
 0x149   :  { %v370_v45 = vadd.f32 %v883_v42, %v369_v43 }
 0x14b   :  { %v374_v46 = vpack.c.bf16 %v370_v45, %v370_v45 }
 0x14d   :  { %v1144_v47 = vunpack.c.l.bf16 %v374_v46  ;;  %v846_v46 = vld [vmem:[#allocation10 + $0x24] sm:$0xf] }
 0x14f   :  { %v380_v48 = vmul.f32 0.5, %v1144_v47 }
 0x150   :  { %v371_v49 = vpop.f32.mrf.mxu2 }
 0x151   :  { %v372_v50 = vadd.f32 %v883_v42, %v371_v49  ;;  %v382_v53 = vmul.f32 1.442695, %v380_v48  ;;  %v776_v42 = vld [vmem:[#allocation10 + $0x38] sm:$0xf0]  ;;  %v768_v49 = vld [vmem:[#allocation10 + $0x28] sm:$0xf0] }
 0x152   :  { %v779_v43 = vor.u32 %v848_v40, %v776_v42 }
 0x153   :  { %v375_v51 = vpack.c.bf16 %v372_v50, %v372_v50  ;;  %v861_v52 = vpack.c.bf16 %v372_v50, %v370_v45  ;;  %885 = vpow2.f32 %v382_v53  ;;  %v847_v45 = vld [vmem:[#allocation10 + $0x24] sm:$0xf0]  ;;  %v771_v50 = vor.u32 %v846_v46, %v768_v49 }
 0x154   :  { %588 = vmatpush.bf16.msrb.mxu0 %v779_v43  ;;  %v767_v48 = vor.u32 %v847_v45, %v766_v44 }
 0x155   :  { %862 = vst [vmem:[%s1178_s11] sm:$0xff] %v861_v52   ;;  %v379_v54 = vunpack.c.l.bf16 %v375_v51  ;;  %v845_v51 = vld [vmem:[#allocation10 + $0x14] sm:$0xf0]  ;;  %v844_v52 = vld [vmem:[#allocation10 + $0x14] sm:$0xf] }
 0x156   :  { %575 = vmatpush.bf16.msrb.mxu3 %v767_v48 }
 0x157   :  { %v381_v55 = vmul.f32 0.5, %v379_v54 }
 0x158   :  { %589 = vmatpush.bf16.msrb.mxu0 %v771_v50 }
 0x159   :  { %v384_v56 = vmul.f32 1.442695, %v381_v55  ;;  %v886_v57 = vpop.eup %885 }
 0x15b   :  { %887 = vpow2.f32 %v384_v56  ;;  %v750_v56 = vld [vmem:[#allocation10] sm:$0xf] }
 0x161   :  { %v888_v58 = vpop.eup %887 }
 0x162   :  { %v877_v59 = vpack.i.bf16 %v888_v58, %v886_v57  ;;  %v843_v57 = vld [vmem:[#allocation10 + $0x4] sm:$0xf0]  ;;  %v842_v58 = vld [vmem:[#allocation10 + $0x4] sm:$0xf] }
 0x163   :  { %v755_v61 = vor.u32 %v842_v58, %v752_v60 }
 0x164   :  { %878 = vrot.lane.b32.xlu0 %v877_v59, %s1042_s25  ;;  %v751_v59 = vor.u32 %v843_v57, %v750_v56 }
 0x1d6   :  { %v879_v26 = vpop.permute.xlu0 %878 }
 0x1d7   :  { %v881_v27 = vunpack.i.h.bf16 %v879_v26  ;;  %v880_v28 = vunpack.i.l.bf16 %v879_v26 }
 0x1d9   :  { %v403_v29 = vmul.f32 %v881_v27, %v866_v25  ;;  %v402_v30 = vmul.f32 %v880_v28, %v865_v24 }
 0x1db   :  { %v405_v31 = vpack.c.bf16 %v403_v29, %v403_v29  ;;  %v404_v32 = vpack.c.bf16 %v402_v30, %v402_v30 }
 0x1dd   :  { %v407_v33 = vunpack.c.l.bf16 %v405_v31  ;;  %v406_v34 = vunpack.c.l.bf16 %v404_v32 }
 0x1df   :  { %v409_v35 = vadd.f32 %v407_v33, %v379_v54  ;;  %v408_v36 = vadd.f32 %v406_v34, %v1144_v47  ;;  %v758_v47 = vld [vmem:[#allocation10 + $0x10] sm:$0xf]  ;;  %v760_v54 = vld [vmem:[#allocation10 + $0x18] sm:$0xf0] }
 0x1e0   :  { %v759_v53 = vor.u32 %v845_v51, %v758_v47  ;;  %v763_v55 = vor.u32 %v844_v52, %v760_v54 }
 0x1e1   :  { %v410_v37 = vpack.c.bf16 %v409_v35, %v408_v36 }
 0x1e2   :  { %576 = vmatpush.bf16.msrb.mxu3 %v759_v53  ;;  %590 = vmatpush.bf16.msrb.mxu0 %v763_v55 }
 0x1e3   :  { %747 = vmatmul.msk.bf16.vlgmr.msra.gmra.mxu3 %vm447_vm0, %v410_v37 }
 0x1e6   :  { %577 = vmatpush.bf16.msrb.mxu3 %v751_v59  ;;  %591 = vmatpush.bf16.msrb.mxu0 %v755_v61 }
 0x266   :  { %v460_v62 = vpop.f32.mrf.mxu3 }
 0x267   :  { %v461_v0 = vadd.f32 %v884_v63, %v460_v62 }
 0x269   :  { %v465_v3 = vmax.f32 %v461_v0, 0.0 }
 0x26e   :  { %v462_v1 = vpop.f32.mrf.mxu3 }
 0x26f   :  { %v463_v2 = vadd.f32 %v884_v63, %v462_v1 }
 0x271   :  { %v466_v4 = vmax.f32 %v463_v2, 0.0 }
 0x273   :  { %v467_v5 = vpack.c.bf16 %v466_v4, %v465_v3 }
 0x275   :  { %578 = vmatmul.bf16.vlgmr.msrb.gmra.mxu3 %v467_v5  ;;  %592 = vmatmul.bf16.vlgmr.msrb.gmra.mxu0 %v467_v5 }
 0x2f2   :  { %v593_v7 = vpop.f32.mrf.mxu0 }
 0x2f3   :  { %v594_v11 = vadd.f32 %v593_v7, %v487_v8 }
 0x2f8   :  { %v579_v10 = vpop.f32.mrf.mxu3 }
 0x2f9   :  { %v580_v12 = vadd.f32 %v579_v10, %v486_v9 }
 0x2fa   :  { %v595_v14 = vpop.f32.mrf.mxu0 }
 0x2fb   :  { %v598_v13 = vpack.c.bf16 %v594_v11, %v580_v12  ;;  %v596_v16 = vadd.f32 %v595_v14, %v487_v8 }
 0x2fd   :  { %600 = vst [vmem:[#allocation11] sm:$0xff] %v598_v13 }
 0x300   :  { %v581_v15 = vpop.f32.mrf.mxu3 }
 0x301   :  { %v582_v17 = vadd.f32 %v581_v15, %v486_v9 }
 0x303   :  { %v599_v18 = vpack.c.bf16 %v596_v16, %v582_v17 }
 0x305   :  { %601 = vst [vmem:[#allocation11 + $0x8] sm:$0xff] %v599_v18 }
 0x306   :  { %614 = dma.vmem_to_hbm [thread:$0]  %s607_s30, 256, %s609_s13, [#allocation4], %s1046_s16, %s1046_s16, %s1047_s17  }
 0x307   :  { %1039 = dma.done.wait [#allocation4], 256  }
 0x308   :  { %1040 = vsyncadd [#allocation4], 4294967040 }
 0x309   :  { %623 = vsyncpa [#allocation3], 1 }
 0x30a   :  { %624 = vsyncpa [#allocation6], 1 }
 0x30b   :  { %625 = vsyncpa [#allocation9], 1 }
 0x30c   :  { %626 = vsyncpa [#allocation4], 1 }

</bundles_post_ra>
